<compile_context>
chip_gen: v7x
topology: tpu7x:2x2x1
jax: 0.10.0
libtpu: 0.0.40
codegen_flags: <defaults>
</compile_context>

<pallas_src>
import jax
import jax.numpy as jnp
from jax.experimental import pallas as pl
from jax.experimental.pallas import tpu as pltpu

LANE = 128   # TPU lane width
OUT = 2      # fc3 output features


def _round_up(n, m):
    return ((n + m - 1) // m) * m


def _f32_footprint(shape):
    """VMEM bytes of an f32 2-D buffer after (8, 128) tile padding."""
    r, c = shape
    return _round_up(max(r, 1), 8) * _round_up(max(c, 1), LANE) * 4


# ---------------------------------------------------------------------------
# Kernel: fc1+relu, fc2+sigmoid, shared fc3 head + sigmoid.
# x block is unpadded (TB, num_in); hidden dim is padded to 128 lanes with
# zero weights/biases so padded lanes never contaminate valid output lanes;
# fc3 head is computed and stored at its true width of 2.
# ---------------------------------------------------------------------------
def placing_net_kernel(x_ref, w1_ref, b1_ref, w2_ref, b2_ref, w3_ref, b3_ref,
                       out_ref):
    x = x_ref[...]                                                   # (TB, num_in)

    # fc1 + relu
    h1 = jnp.dot(x, w1_ref[...], preferred_element_type=jnp.float32) + b1_ref[...]
    h1 = jnp.maximum(h1, 0.0)                                        # (TB, Hp)

    # fc2 + sigmoid
    h2 = jnp.dot(h1, w2_ref[...], preferred_element_type=jnp.float32) + b2_ref[...]
    h2 = jax.nn.sigmoid(h2)                                          # (TB, Hp)

    # shared fc3 head (ONE (Hp, 2) weight) + sigmoid, stored at width 2
    o = jnp.dot(h2, w3_ref[...], preferred_element_type=jnp.float32) + b3_ref[...]
    out_ref[...] = jax.nn.sigmoid(o)                                 # (TB, 2)


# ---------------------------------------------------------------------------
# One-time parameter preparation (hoisted out of the per-call forward):
# pad ONLY the hidden dim to 128 lanes; keep fc1's K and fc3's N unpadded.
# ---------------------------------------------------------------------------
def prepare_params(params):
    w1, b1, w2, b2, w3s, b3s = params       # w3s: (H, 2), b3s: (1, 2) shared head
    num_in, H = w1.shape
    Hp = _round_up(H, LANE)
    f32 = jnp.float32

    def pad2(a, r, c):
        return jnp.zeros((r, c), f32).at[:a.shape[0], :a.shape[1]].set(a.astype(f32))

    w1_p = pad2(w1, num_in, Hp)             # (num_in, Hp)  -- K left unpadded
    b1_p = pad2(b1, 1, Hp)                  # (1, Hp)
    w2_p = pad2(w2, Hp, Hp)                 # (Hp, Hp)
    b2_p = pad2(b2, 1, Hp)                  # (1, Hp)
    w3_p = pad2(w3s, Hp, OUT)               # (Hp, 2)       -- N left unpadded
    b3_p = b3s.astype(f32).reshape(1, OUT)  # (1, 2)
    return (w1_p, b1_p, w2_p, b2_p, w3_p, b3_p)


# ---------------------------------------------------------------------------
# Wrapper: batch-tiled 1-D grid, VMEM-resident weights, shared head broadcast
# to the (B, S, C, 2) stacking the PyTorch forward produces.
# ---------------------------------------------------------------------------
def placing_net_forward(x, padded_params, server_number, container_number,
                        *, batch_tile=1024):
    w1_p, b1_p, w2_p, b2_p, w3_p, b3_p = padded_params
    B, num_in = x.shape
    Hp = w1_p.shape[1]
    f32 = jnp.float32

    # ---- batch tiling: prefer >= 2 grid steps so v7x megacore can shard ----
    if B > batch_tile:
        TB = batch_tile
    else:
        TB = max(8, min(batch_tile, _round_up(pl.cdiv(B, 2), 8)))
    B_pad = _round_up(B, TB)
    grid = (B_pad // TB,)

    # ---- pad ONLY the batch dim of x, and only when needed -----------------
    x = x.astype(f32)
    if B_pad != B:
        x_p = jnp.zeros((B_pad, num_in), f32).at[:B].set(x)
    else:
        x_p = x

    # ---- block specs --------------------------------------------------------
    x_spec = pl.BlockSpec((TB, num_in), lambda i: (i, 0))
    out_spec = pl.BlockSpec((TB, OUT), lambda i: (i, 0))
    # Weights / biases: full-extent blocks, constant index_map -> VMEM-resident.
    w1_spec = pl.BlockSpec((num_in, Hp), lambda i: (0, 0))
    b1_spec = pl.BlockSpec((1, Hp), lambda i: (0, 0))
    w2_spec = pl.BlockSpec((Hp, Hp), lambda i: (0, 0))
    b2_spec = pl.BlockSpec((1, Hp), lambda i: (0, 0))
    w3_spec = pl.BlockSpec((Hp, OUT), lambda i: (0, 0))
    b3_spec = pl.BlockSpec((1, OUT), lambda i: (0, 0))

    # ---- VMEM budget (double-buffered blocks + live intermediates) ---------
    vmem_need = (
        2 * _f32_footprint((TB, num_in)) + 2 * _f32_footprint((TB, OUT))
        + 2 * (_f32_footprint((num_in, Hp)) + _f32_footprint((1, Hp))
               + _f32_footprint((Hp, Hp)) + _f32_footprint((1, Hp))
               + _f32_footprint((Hp, OUT)) + _f32_footprint((1, OUT)))
        + 4 * _f32_footprint((TB, Hp)))                 # h1 / h2 temporaries
    vmem_limit = int(min(100 * 2**20, max(2 * vmem_need, 16 * 2**20)))

    # ---- cost estimate (advisory) -------------------------------------------
    flops = 2 * B_pad * (num_in * Hp + Hp * Hp + Hp * OUT)
    transcendentals = B_pad * (Hp + OUT)                # exp in each sigmoid
    bytes_accessed = 4 * (B_pad * num_in + num_in * Hp + Hp + Hp * Hp + Hp
                          + Hp * OUT + OUT + B_pad * OUT)
    cost = pl.CostEstimate(flops=flops, transcendentals=transcendentals,
                           bytes_accessed=bytes_accessed)

    out_flat = pl.pallas_call(
        placing_net_kernel,
        out_shape=jax.ShapeDtypeStruct((B_pad, OUT), f32),
        grid=grid,
        in_specs=[x_spec, w1_spec, b1_spec, w2_spec, b2_spec, w3_spec, b3_spec],
        out_specs=out_spec,
        compiler_params=pltpu.CompilerParams(
            dimension_semantics=("parallel",),          # batch axis -> megacore
            vmem_limit_bytes=vmem_limit),
        cost_estimate=cost,
    )(x_p, w1_p, b1_p, w2_p, b2_p, w3_p, b3_p)

    # Shared-head output: out[:, i, j, :] == sigmoid(fc3_shared(h2)) for all i, j.
    # Consumers that only need the head should use out_flat[:B] directly and
    # skip this materialized broadcast.
    head = out_flat[:B]                                              # (B, 2)
    return jnp.broadcast_to(head[:, None, None, :],
                            (B, server_number, container_number, OUT))


# ---------------------------------------------------------------------------
# Parameter init mirroring the PyTorch Linear shapes (synthetic weights).
# fc3 is ONE shared Linear(hidden, 2) aliased over every (server, container).
# ---------------------------------------------------------------------------
def init_params(key, num_in, hidden_dim):
    k1, k2, k3, k4, k5, k6 = jax.random.split(key, 6)

    def unif(k, shape, fan_in):
        bound = 1.0 / jnp.sqrt(jnp.float32(fan_in))
        return jax.random.uniform(k, shape, jnp.float32, -bound, bound)

    w1 = unif(k1, (num_in, hidden_dim), num_in)
    b1 = unif(k2, (1, hidden_dim), num_in)
    w2 = unif(k3, (hidden_dim, hidden_dim), hidden_dim)
    b2 = unif(k4, (1, hidden_dim), hidden_dim)
    w3s = unif(k5, (hidden_dim, 2), hidden_dim)      # shared fc3 weight
    b3s = unif(k6, (1, 2), hidden_dim)               # shared fc3 bias
    return (w1, b1, w2, b2, w3s, b3s)


# ---------------------------------------------------------------------------
# Pure-JAX reference mirroring the PyTorch forward (per-head loop + stack).
# ---------------------------------------------------------------------------
def reference_forward(x, params, server_number, container_number):
    w1, b1, w2, b2, w3s, b3s = params
    h1 = jnp.maximum(x @ w1 + b1, 0.0)
    h2 = jax.nn.sigmoid(h1 @ w2 + b2)
    head = jax.nn.sigmoid(h2 @ w3s + b3s)            # same shared module output
    per_server = jnp.stack([head] * container_number, axis=1)    # (B, C, 2)
    return jnp.stack([per_server] * server_number, axis=1)       # (B, S, C, 2)


if __name__ == "__main__":
    # small shapes consistent with the module's forward
    batch = 8
    num_in = 16
    hidden_dim = 32
    server_number = 2
    container_number = 3

    key = jax.random.PRNGKey(0)
    kx, kp = jax.random.split(key)
    x = jax.random.normal(kx, (batch, num_in), dtype=jnp.float32)
    params = init_params(kp, num_in, hidden_dim)
    padded_params = prepare_params(params)           # pad weights ONCE

    out = placing_net_forward(x, padded_params, server_number, container_number)
    out = jax.block_until_ready(out)

    ref = reference_forward(x, params, server_number, container_number)
    assert out.shape == (batch, server_number, container_number, 2)
    assert jnp.allclose(out, ref, atol=1e-5, rtol=1e-5)

    print("KERNEL_OK")
</pallas_src>

<mosaic_0001>
module attributes {stable_mosaic.version = 11 : i64} {
  func.func @placing_net_kernel(%arg0: i32, %arg1: memref<8x16xf32, #tpu.memory_space<vmem>>, %arg2: memref<16x128xf32, #tpu.memory_space<vmem>>, %arg3: memref<1x128xf32, #tpu.memory_space<vmem>>, %arg4: memref<128x128xf32, #tpu.memory_space<vmem>>, %arg5: memref<1x128xf32, #tpu.memory_space<vmem>>, %arg6: memref<128x2xf32, #tpu.memory_space<vmem>>, %arg7: memref<1x2xf32, #tpu.memory_space<vmem>>, %arg8: memref<8x2xf32, #tpu.memory_space<vmem>>) attributes {dimension_semantics = [#tpu.dimension_semantics<parallel>], iteration_bounds = array<i64: 1>, scalar_prefetch = 0 : i64, scratch_operands = 0 : i64, tpu.core_type = #tpu.core_type<tc>, window_params = [{transform_indices = @transform_0, window_bounds = array<i64: 8, 16>}, {pipeline_mode = #tpu.pipeline_mode<synchronous>, transform_indices = @transform_1, window_bounds = array<i64: 16, 128>}, {pipeline_mode = #tpu.pipeline_mode<synchronous>, transform_indices = @transform_2, window_bounds = array<i64: 1, 128>}, {pipeline_mode = #tpu.pipeline_mode<synchronous>, transform_indices = @transform_3, window_bounds = array<i64: 128, 128>}, {pipeline_mode = #tpu.pipeline_mode<synchronous>, transform_indices = @transform_4, window_bounds = array<i64: 1, 128>}, {pipeline_mode = #tpu.pipeline_mode<synchronous>, transform_indices = @transform_5, window_bounds = array<i64: 128, 2>}, {pipeline_mode = #tpu.pipeline_mode<synchronous>, transform_indices = @transform_6, window_bounds = array<i64: 1, 2>}, {transform_indices = @transform_7, window_bounds = array<i64: 8, 2>}]} {
    %c0 = arith.constant 0 : index
    %c0_0 = arith.constant 0 : index
    %0 = vector.load %arg1[%c0, %c0_0] : memref<8x16xf32, #tpu.memory_space<vmem>>, vector<8x16xf32>
    %c0_1 = arith.constant 0 : index
    %c0_2 = arith.constant 0 : index
    %1 = vector.load %arg2[%c0_1, %c0_2] : memref<16x128xf32, #tpu.memory_space<vmem>>, vector<16x128xf32>
    %cst = arith.constant dense<0.000000e+00> : vector<8x128xf32>
    %2 = tpu.matmul %0, %1, %cst {dimension_numbers = #tpu.dot_dimension_numbers<[1], [0], [0], [1], [0, 0, 1, 1], [], []>} : vector<8x16xf32>, vector<16x128xf32>, vector<8x128xf32> -> vector<8x128xf32>
    %c0_3 = arith.constant 0 : index
    %c0_4 = arith.constant 0 : index
    %3 = vector.load %arg3[%c0_3, %c0_4] : memref<1x128xf32, #tpu.memory_space<vmem>>, vector<1x128xf32>
    %4 = vector.broadcast %3 : vector<1x128xf32> to vector<8x128xf32>
    %5 = arith.addf %2, %4 : vector<8x128xf32>
    %cst_5 = arith.constant 0.000000e+00 : f32
    %6 = vector.broadcast %cst_5 : f32 to vector<8x128xf32>
    %7 = arith.maximumf %5, %6 : vector<8x128xf32>
    %c0_6 = arith.constant 0 : index
    %c0_7 = arith.constant 0 : index
    %8 = vector.load %arg4[%c0_6, %c0_7] : memref<128x128xf32, #tpu.memory_space<vmem>>, vector<128x128xf32>
    %cst_8 = arith.constant dense<0.000000e+00> : vector<8x128xf32>
    %9 = tpu.matmul %7, %8, %cst_8 {dimension_numbers = #tpu.dot_dimension_numbers<[1], [0], [0], [1], [0, 0, 1, 1], [], []>} : vector<8x128xf32>, vector<128x128xf32>, vector<8x128xf32> -> vector<8x128xf32>
    %c0_9 = arith.constant 0 : index
    %c0_10 = arith.constant 0 : index
    %10 = vector.load %arg5[%c0_9, %c0_10] : memref<1x128xf32, #tpu.memory_space<vmem>>, vector<1x128xf32>
    %11 = vector.broadcast %10 : vector<1x128xf32> to vector<8x128xf32>
    %12 = arith.addf %9, %11 : vector<8x128xf32>
    %13 = arith.negf %12 : vector<8x128xf32>
    %14 = math.exp %13 : vector<8x128xf32>
    %cst_11 = arith.constant 1.000000e+00 : f32
    %15 = vector.broadcast %cst_11 : f32 to vector<8x128xf32>
    %16 = arith.addf %15, %14 : vector<8x128xf32>
    %17 = arith.divf %15, %16 : vector<8x128xf32>
    %c0_12 = arith.constant 0 : index
    %c0_13 = arith.constant 0 : index
    %18 = vector.load %arg6[%c0_12, %c0_13] : memref<128x2xf32, #tpu.memory_space<vmem>>, vector<128x2xf32>
    %cst_14 = arith.constant dense<0.000000e+00> : vector<8x2xf32>
    %19 = tpu.matmul %17, %18, %cst_14 {dimension_numbers = #tpu.dot_dimension_numbers<[1], [0], [0], [1], [0, 0, 1, 1], [], []>} : vector<8x128xf32>, vector<128x2xf32>, vector<8x2xf32> -> vector<8x2xf32>
    %c0_15 = arith.constant 0 : index
    %c0_16 = arith.constant 0 : index
    %20 = vector.load %arg7[%c0_15, %c0_16] : memref<1x2xf32, #tpu.memory_space<vmem>>, vector<1x2xf32>
    %21 = vector.broadcast %20 : vector<1x2xf32> to vector<8x2xf32>
    %22 = arith.addf %19, %21 : vector<8x2xf32>
    %23 = arith.negf %22 : vector<8x2xf32>
    %24 = math.exp %23 : vector<8x2xf32>
    %cst_17 = arith.constant 1.000000e+00 : f32
    %25 = vector.broadcast %cst_17 : f32 to vector<8x2xf32>
    %26 = arith.addf %25, %24 : vector<8x2xf32>
    %27 = arith.divf %25, %26 : vector<8x2xf32>
    %c0_18 = arith.constant 0 : index
    %c0_19 = arith.constant 0 : index
    %28 = vector.load %arg8[%c0_18, %c0_19] : memref<8x2xf32, #tpu.memory_space<vmem>>, vector<8x2xf32>
    tpu.vector_store %arg8[%c0_18, %c0_19], %27 {strides = array<i32>} : memref<8x2xf32, #tpu.memory_space<vmem>>, vector<8x2xf32>,
    return
  }
  func.func @transform_0(%arg0: i32) -> (i32, i32) {
    %c0_i32 = arith.constant 0 : i32
    %c0_i32_0 = arith.constant 0 : i32
    return %arg0, %c0_i32 : i32, i32
  }
  func.func @transform_1(%arg0: i32) -> (i32, i32) {
    %c0_i32 = arith.constant 0 : i32
    %c0_i32_0 = arith.constant 0 : i32
    %c0_i32_1 = arith.constant 0 : i32
    return %c0_i32, %c0_i32_0 : i32, i32
  }
  func.func @transform_2(%arg0: i32) -> (i32, i32) {
    %c0_i32 = arith.constant 0 : i32
    %c0_i32_0 = arith.constant 0 : i32
    %c0_i32_1 = arith.constant 0 : i32
    return %c0_i32, %c0_i32_0 : i32, i32
  }
  func.func @transform_3(%arg0: i32) -> (i32, i32) {
    %c0_i32 = arith.constant 0 : i32
    %c0_i32_0 = arith.constant 0 : i32
    %c0_i32_1 = arith.constant 0 : i32
    return %c0_i32, %c0_i32_0 : i32, i32
  }
  func.func @transform_4(%arg0: i32) -> (i32, i32) {
    %c0_i32 = arith.constant 0 : i32
    %c0_i32_0 = arith.constant 0 : i32
    %c0_i32_1 = arith.constant 0 : i32
    return %c0_i32, %c0_i32_0 : i32, i32
  }
  func.func @transform_5(%arg0: i32) -> (i32, i32) {
    %c0_i32 = arith.constant 0 : i32
    %c0_i32_0 = arith.constant 0 : i32
    %c0_i32_1 = arith.constant 0 : i32
    return %c0_i32, %c0_i32_0 : i32, i32
  }
  func.func @transform_6(%arg0: i32) -> (i32, i32) {
    %c0_i32 = arith.constant 0 : i32
    %c0_i32_0 = arith.constant 0 : i32
    %c0_i32_1 = arith.constant 0 : i32
    return %c0_i32, %c0_i32_0 : i32, i32
  }
  func.func @transform_7(%arg0: i32) -> (i32, i32) {
    %c0_i32 = arith.constant 0 : i32
    %c0_i32_0 = arith.constant 0 : i32
    return %arg0, %c0_i32 : i32, i32
  }
}

</mosaic_0001>

<bundles_post_ra>
// kernel: tpu_custom_call.1
= control target key start
LH: loop header
LB: loop body
LE: loop exit
PB: predicated region body
PF: predicated region fallthrough
CT: control target
= control target key end

     0   :  { %12 = vsyncpa [#allocation3], 0  ;;  %s539_s24 = smov [#allocation2]   ;;  %s728_s0 = inlined_call_operand.vmem [shape: f32[8,16], index: 0, kind: input, shape index: {}]   ;;  %s729_s1 = inlined_call_operand.hbm [shape: f32[16,128], index: 1, kind: input, shape index: {}]   ;;  %s730_s2 = inlined_call_operand.vmem [shape: f32[1,128], index: 2, kind: input, shape index: {}]   ;;  %s731_s3 = inlined_call_operand.vmem [shape: f32[128,128], index: 3, kind: input, shape index: {}]   ;;  %s732_s4 = inlined_call_operand.vmem [shape: f32[1,128], index: 4, kind: input, shape index: {}]   ;;  %s733_s5 = inlined_call_operand.vmem [shape: f32[128,2], index: 5, kind: input, shape index: {}]   ;;  %s734_s6 = inlined_call_operand.vmem [shape: f32[1,2], index: 6, kind: input, shape index: {}]   ;;  %s735_s7 = inlined_call_operand.vmem [shape: f32[8,2], index: 7, kind: output, shape index: {}]  }
   0x1   :  { %s20_s25 = sshll.u32 %s539_s24, 4  ;;  %s515_s28 = scalar_lea.hbm %s729_s1, 256  ;;  %s21_s25 = int_to_ptr.vmem [resolvable:$true] %s20_s25 }
   0x2   :  { %p516_p0 = scmp.ne.s32.totalorder %s729_s1, %s515_s28  ;;  %p519_p1 = scmp.lt.u32.totalorder %s515_s28, %s729_s1 }
   0x4   :  { %p521_p2 = pnand %p519_p1, %p516_p0 }
   0x6   :  { %524 = shalt.err (!%p521_p2)
}
   0x7   :  { %s525_s10 = scalar_lea.vmem %s21_s25, 256  ;;  %p530_p4 = scmp.lt.s32.totalorder %s21_s25, %s21_s25 }
   0x8   :  { %p526_p3 = scmp.ne.s32.totalorder %s21_s25, %s525_s10  ;;  %p531_p5 = scmp.lt.s32.totalorder %s525_s10, %s525_s10 }
   0xa   :  { %p532_p6 = por %p531_p5, %p530_p4 }
   0xc   :  { %p533_p7 = pnand %p532_p6, %p526_p3 }
   0xe   :  { %536 = shalt.err (!%p533_p7)
}
   0xf   :  { %s540_s11 = smov 128   ;;  %s541_s12 = smov 8  }
  0x10   :  { %26 = dma.hbm_to_vmem [thread:$0]  %s729_s1, 256, %s21_s25, [#allocation3], %s540_s11, %s540_s11, %s541_s12  }
  0x11   :  { %537 = dma.done.wait [#allocation3], 256  }
  0x12   :  { %538 = vsyncadd [#allocation3], 4294967040  ;;  %v542_v0 = vmov 0.0|0.0   ;;  %vm543_vm0 = vmmov 0   ;;  %v544_v1 = vmov 0.0   ;;  %v41_v2 = vld [vmem:[#allocation2] sm:$0xff] }
  0x13   :  { %450 = vmatprep.subr.bf16.mxu0 %v542_v0  ;;  %377 = vmatprep.mubr.msk.f32.mxu0 %vm543_vm0, %v544_v1  ;;  %v42_v3 = vld [vmem:[#allocation2 + $0x8] sm:$0xff]  ;;  %v125_v5 = vld [vmem:[%s731_s3] sm:$0xff]  ;;  %v127_v7 = vld [vmem:[%s731_s3 + $0x10] sm:$0xff]  ;;  %vm50_vm1 = vcmask 130048   ;;  %vm323_vm2 = vcmask 15360  }
  0x14   :  { %453 = vmatprep.subr.bf16.mxu1 %v542_v0  ;;  %412 = vmatprep.mubr.msk.f32.mxu1 %vm543_vm0, %v544_v1  ;;  %v451_v4 = vpack.c.bf16 %v42_v3, %v41_v2  ;;  %v126_v6 = vld [vmem:[%s731_s3 + $0x8] sm:$0xff]  ;;  %v128_v9 = vld [vmem:[%s731_s3 + $0x18] sm:$0xff]  ;;  %v40_v10 = vld [vmem:[%s728_s0] sm:$0xff] }
  0x15   :  { %v454_v8 = vpack.c.bf16 %v126_v6, %v125_v5  ;;  %v457_v11 = vpack.c.bf16 %v128_v9, %v127_v7  ;;  %v129_v12 = vld [vmem:[%s731_s3 + $0x20] sm:$0xff]  ;;  %v130_v13 = vld [vmem:[%s731_s3 + $0x28] sm:$0xff]  ;;  %v131_v15 = vld [vmem:[%s731_s3 + $0x30] sm:$0xff] }
  0x16   :  { %452 = vmatpush3.bf16.msra.mxu0 %v451_v4  ;;  %v460_v14 = vpack.c.bf16 %v130_v13, %v129_v12  ;;  %v132_v16 = vld [vmem:[%s731_s3 + $0x38] sm:$0xff]  ;;  %v133_v18 = vld [vmem:[%s731_s3 + $0x40] sm:$0xff]  ;;  %v134_v19 = vld [vmem:[%s731_s3 + $0x48] sm:$0xff] }
  0x17   :  { %455 = vmatpush3.bf16.msra.mxu1 %v454_v8  ;;  %477 = vmatprep.subr.bf16.mxu0 %v542_v0  ;;  %v463_v17 = vpack.c.bf16 %v132_v16, %v131_v15  ;;  %v466_v20 = vpack.c.bf16 %v134_v19, %v133_v18  ;;  %v135_v21 = vld [vmem:[%s731_s3 + $0x50] sm:$0xff]  ;;  %v136_v22 = vld [vmem:[%s731_s3 + $0x58] sm:$0xff]  ;;  %v137_v24 = vld [vmem:[%s731_s3 + $0x60] sm:$0xff] }
  0x18   :  { %456 = vmatprep.subr.bf16.mxu1 %v542_v0  ;;  %v469_v23 = vpack.c.bf16 %v136_v22, %v135_v21  ;;  %v138_v25 = vld [vmem:[%s731_s3 + $0x68] sm:$0xff]  ;;  %v139_v27 = vld [vmem:[%s731_s3 + $0x70] sm:$0xff]  ;;  %v140_v28 = vld [vmem:[%s731_s3 + $0x78] sm:$0xff] }
  0x19   :  { %378 = vmatmul.mubr.msk.f32.vlgmr.msra.gmra.mrb[0].mxu0 %vm50_vm1, %v40_v10  ;;  %v472_v26 = vpack.c.bf16 %v138_v25, %v137_v24  ;;  %v475_v29 = vpack.c.bf16 %v140_v28, %v139_v27  ;;  %v224_v30 = vld [vmem:[%s733_s5] sm:$0xff]  ;;  %v225_v31 = vld [vmem:[%s733_s5 + $0x8] sm:$0xff]  ;;  %v226_v38 = vld [vmem:[%s733_s5 + $0x10] sm:$0xff] }
  0x1a   :  { %447 = vmatprep.mubr.msk.f32.mxu0 %vm543_vm0, %v544_v1  ;;  %v478_v32 = vpack.c.bf16 %v225_v31, %v224_v30  ;;  %v330_v33 = vld [vmem:[%s730_s2] ss:$0 sm:$0xff]  ;;  %v227_v39 = vld [vmem:[%s733_s5 + $0x18] sm:$0xff]  ;;  %v229_v42 = vld [vmem:[%s733_s5 + $0x28] sm:$0xff] }
  0x1b   :  { %458 = vmatpush3.bf16.msra.mxu1 %v457_v11  ;;  %v481_v40 = vpack.c.bf16 %v227_v39, %v226_v38  ;;  %v228_v41 = vld [vmem:[%s733_s5 + $0x20] sm:$0xff]  ;;  %v230_v44 = vld [vmem:[%s733_s5 + $0x30] sm:$0xff]  ;;  %v231_v45 = vld [vmem:[%s733_s5 + $0x38] sm:$0xff] }
  0x1c   :  { %459 = vmatprep.subr.bf16.mxu1 %v542_v0  ;;  %479 = vmatpush3.bf16.msra.mxu0 %v478_v32  ;;  %v484_v43 = vpack.c.bf16 %v229_v42, %v228_v41  ;;  %v487_v46 = vpack.c.bf16 %v231_v45, %v230_v44  ;;  %v232_v47 = vld [vmem:[%s733_s5 + $0x40] sm:$0xff]  ;;  %v233_v48 = vld [vmem:[%s733_s5 + $0x48] sm:$0xff]  ;;  %v234_v50 = vld [vmem:[%s733_s5 + $0x50] sm:$0xff] }
  0x1d   :  { %480 = vmatprep.subr.bf16.mxu0 %v542_v0  ;;  %v490_v49 = vpack.c.bf16 %v233_v48, %v232_v47  ;;  %v235_v51 = vld [vmem:[%s733_s5 + $0x58] sm:$0xff]  ;;  %v236_v53 = vld [vmem:[%s733_s5 + $0x60] sm:$0xff]  ;;  %v237_v54 = vld [vmem:[%s733_s5 + $0x68] sm:$0xff] }
  0x1e   :  { %v493_v52 = vpack.c.bf16 %v235_v51, %v234_v50  ;;  %v496_v55 = vpack.c.bf16 %v237_v54, %v236_v53  ;;  %v238_v56 = vld [vmem:[%s733_s5 + $0x70] sm:$0xff]  ;;  %v239_v57 = vld [vmem:[%s733_s5 + $0x78] sm:$0xff]  ;;  %v332_v59 = vld [vmem:[%s732_s4] ss:$0 sm:$0xff] }
  0x1f   :  { %461 = vmatpush3.bf16.msra.mxu1 %v460_v14  ;;  %v499_v58 = vpack.c.bf16 %v239_v57, %v238_v56  ;;  %v334_v4 = vld [vmem:[%s734_s6] ss:$0 sm:$0xff] }
  0x20   :  { %462 = vmatprep.subr.bf16.mxu1 %v542_v0  ;;  %482 = vmatpush3.bf16.msra.mxu0 %v481_v40 }
  0x21   :  { %483 = vmatprep.subr.bf16.mxu0 %v542_v0 }
  0x23   :  { %464 = vmatpush3.bf16.msra.mxu1 %v463_v17 }
  0x24   :  { %465 = vmatprep.subr.bf16.mxu1 %v542_v0  ;;  %485 = vmatpush3.bf16.msra.mxu0 %v484_v43 }
  0x25   :  { %486 = vmatprep.subr.bf16.mxu0 %v542_v0 }
  0x27   :  { %467 = vmatpush3.bf16.msra.mxu1 %v466_v20 }
  0x28   :  { %468 = vmatprep.subr.bf16.mxu1 %v542_v0  ;;  %488 = vmatpush3.bf16.msra.mxu0 %v487_v46 }
  0x29   :  { %489 = vmatprep.subr.bf16.mxu0 %v542_v0 }
  0x2b   :  { %470 = vmatpush3.bf16.msra.mxu1 %v469_v23 }
  0x2c   :  { %471 = vmatprep.subr.bf16.mxu1 %v542_v0  ;;  %491 = vmatpush3.bf16.msra.mxu0 %v490_v49 }
  0x2d   :  { %492 = vmatprep.subr.bf16.mxu0 %v542_v0 }
  0x2f   :  { %473 = vmatpush3.bf16.msra.mxu1 %v472_v26 }
  0x30   :  { %474 = vmatprep.subr.bf16.mxu1 %v542_v0  ;;  %494 = vmatpush3.bf16.msra.mxu0 %v493_v52 }
  0x31   :  { %495 = vmatprep.subr.bf16.mxu0 %v542_v0 }
  0x33   :  { %476 = vmatpush3.bf16.msra.mxu1 %v475_v29 }
  0x34   :  { %497 = vmatpush3.bf16.msra.mxu0 %v496_v55 }
  0x35   :  { %498 = vmatprep.subr.bf16.mxu0 %v542_v0 }
  0x38   :  { %500 = vmatpush3.bf16.msra.mxu0 %v499_v58 }
  0xec   :  { %v120_v34 = vpop.f32.mrb[0].mxu0 }
  0xed   :  { %v121_v35 = vadd.f32 %v330_v33, %v120_v34  ;;  %v379_v36 = vpop.f32.mrb[1].mxu0 }
  0xef   :  { %v124_v37 = vmax.f32 %v121_v35, 0.0 }
  0xf1   :  { %413 = vmatmul.mubr.f32.vlgmr.msra.gmra.mrb[0].mxu1 %v124_v37 }
 0x1c4   :  { %v214_v60 = vpop.f32.mrb[0].mxu1 }
 0x1c5   :  { %v215_v61 = vadd.f32 %v332_v59, %v214_v60  ;;  %v414_v62 = vpop.f32.mrb[1].mxu1 }
 0x1c7   :  { %v333_v63 = vmul.f32 -1.442695, %v215_v61 }
 0x1c9   :  { %507 = vpow2.f32 %v333_v63 }
 0x1d3   :  { %v508_v1 = vpop.eup %507 }
 0x1d4   :  { %v221_v2 = vadd.f32 1.0, %v508_v1 }
 0x1d6   :  { %509 = vrcp.f32 %v221_v2 }
 0x1e0   :  { %v510_v3 = vpop.eup %509 }
 0x1e1   :  { %448 = vmatmul.mubr.f32.vlgmr.msra.gmra.mrb[2].mxu0 %v510_v3 }
 0x2b4   :  { %v313_v0 = vpop.f32.mrb[2].mxu0 }
 0x2b5   :  { %v314_v5 = vadd.f32 %v334_v4, %v313_v0  ;;  %v449_v6 = vpop.f32.mrb[3].mxu0 }
 0x2b7   :  { %v335_v7 = vmul.f32 -1.442695, %v314_v5 }
 0x2b9   :  { %511 = vpow2.f32 %v335_v7 }
 0x2c3   :  { %v512_v8 = vpop.eup %511 }
 0x2c4   :  { %v320_v9 = vadd.f32 1.0, %v512_v8 }
 0x2c6   :  { %513 = vrcp.f32 %v320_v9 }
 0x2d0   :  { %v514_v10 = vpop.eup %513 }
 0x2d1   :  { %324 = vst.msk [vmem:[%s735_s7] sm:$0xff] %vm323_vm2, %v514_v10 }
 0x2d2   :  { %329 = vsyncpa [#allocation3], 1 }

</bundles_post_ra>
